<compile_context>
chip_gen: v7x
topology: tpu7x:2x2x1
jax: 0.10.0
libtpu: 0.0.40
codegen_flags: <defaults>
</compile_context>

<pallas_src>
import jax
import jax.numpy as jnp
from jax.experimental import pallas as pl
from jax.experimental.pallas import tpu as pltpu

K = 3  # kernel_size == stride for nn.MaxPool2d(kernel_size=3)

_VMEM_BLOCK_BUDGET = 44 * 1024 * 1024  # double-buffered block budget; fits every TPU gen


def _maxpool3_kernel(x_ref, o_ref):
    # x_ref block: (Bn, 3*ho_t, 3, wo, C)   -- kw tap already on its own (leading) axis
    # o_ref block: (Bn, ho_t,   wo, C)      -- C on lanes -> dense stores
    bn, h3, _, wo, c = x_ref.shape
    ho = h3 // K

    x = x_ref[...]  # dense load of the whole block
    # kw reduction: init from tap 0, then two maxima (leading-axis slices only).
    m = jnp.maximum(jnp.maximum(x[:, :, 0], x[:, :, 1]), x[:, :, 2])   # (Bn, 3ho, wo, C)
    # Split H -> (ho, kh). Only leading dims change; the (wo, C) layout is untouched.
    m = m.reshape(bn, ho, K, wo, c)
    # kh reduction.
    o_ref[...] = jnp.maximum(jnp.maximum(m[:, :, 0], m[:, :, 1]), m[:, :, 2])


def _padded_tile_bytes(wo, c, itemsize):
    # VMEM pads the second-to-last dim to a sublane multiple and the last dim to 128 lanes.
    sub_mult = 8 * max(1, 4 // itemsize)  # f32: 8, bf16: 16, int8: 32
    wo_p = -(-wo // sub_mult) * sub_mult
    c_p = -(-c // 128) * 128
    return wo_p * c_p * itemsize


def _largest_divisor_le(x, limit):
    limit = max(1, min(x, limit))
    for d in range(limit, 0, -1):
        if x % d == 0:
            return d
    return 1


def maxpool2d_3x3(x):
    """x: (N, C, H, W). Returns (N, C, H//3, W//3) — same semantics as nn.MaxPool2d(3)."""
    n, c, h, w = x.shape
    ho, wo = h // K, w // K
    if ho == 0 or wo == 0:
        raise ValueError(f"Spatial dims ({h}, {w}) are smaller than the 3x3 pooling window.")

    itemsize = x.dtype.itemsize

    # ---- Wrapper-side layout plumbing (plain XLA): crop, NCHW->NHWC, de-interleave kw. ----
    xc = x[:, :, : K * ho, : K * wo]              # ceil_mode=False: drop trailing rows/cols
    xt = jnp.transpose(xc, (0, 2, 3, 1))          # (N, 3ho, 3wo, C)
    xr = xt.reshape(n, K * ho, wo, K, c)          # split W -> (wo, kw)
    xr = jnp.transpose(xr, (0, 1, 3, 2, 4))       # (N, 3ho, kw=3, wo, C)

    # ---- Tile sizing: as many output rows per grid step as fit the VMEM budget. ----
    tile = _padded_tile_bytes(wo, c, itemsize)
    bytes_per_out_row = (3 * K + 1) * tile                      # 9 input slabs + 1 output slab
    max_rows = max(1, _VMEM_BLOCK_BUDGET // (2 * bytes_per_out_row))  # x2: double buffering

    if max_rows >= ho:
        ho_t = ho
        bn = max(1, min(n, max_rows // ho))
        if n >= 2:                                 # keep >= 2 grid steps so v7x's 2 TCs split work
            bn = min(bn, -(-n // 2))
        bn = _largest_divisor_le(n, bn)
        if n == 1 and ho >= 2:                     # single image: split rows for megacore instead
            ho_t = _largest_divisor_le(ho, -(-ho // 2))
    else:
        bn = 1
        ho_t = _largest_divisor_le(ho, max_rows)

    grid = (n // bn, ho // ho_t)

    vmem_limit = 2 * bn * ho_t * bytes_per_out_row + (4 << 20)
    vmem_limit = int(min(max(vmem_limit, 16 << 20), 128 << 20))

    out_nhwc = pl.pallas_call(
        _maxpool3_kernel,
        out_shape=jax.ShapeDtypeStruct((n, ho, wo, c), x.dtype),
        grid_spec=pltpu.PrefetchScalarGridSpec(
            num_scalar_prefetch=0,
            grid=grid,
            in_specs=[pl.BlockSpec((bn, K * ho_t, K, wo, c),
                                   lambda i, r: (i, r, 0, 0, 0))],
            out_specs=pl.BlockSpec((bn, ho_t, wo, c),
                                   lambda i, r: (i, r, 0, 0)),
        ),
        compiler_params=pltpu.CompilerParams(
            dimension_semantics=("parallel", "parallel"),
            vmem_limit_bytes=vmem_limit,
        ),
        cost_estimate=pl.CostEstimate(
            flops=8 * n * c * ho * wo,             # 8 maxima per output element; ~memory-bound
            transcendentals=0,
            bytes_accessed=(n * K * ho * K * wo * c + n * ho * wo * c) * itemsize,
        ),
    )(xr)

    return jnp.transpose(out_nhwc, (0, 3, 1, 2))   # back to NCHW


if __name__ == "__main__":
    key = jax.random.PRNGKey(0)
    # Small NCHW input consistent with the module's forward (any 4D NCHW works).
    x = jax.random.normal(key, (2, 4, 16, 16), dtype=jnp.float32)

    out = maxpool2d_3x3(x)
    out = jax.block_until_ready(out)

    # Reference: identical semantics to torch.nn.MaxPool2d(3, ceil_mode=False).
    ref = jax.lax.reduce_window(
        x, -jnp.inf, jax.lax.max,
        window_dimensions=(1, 1, K, K),
        window_strides=(1, 1, K, K),
        padding="VALID",
    )
    assert out.shape == (2, 4, 5, 5), out.shape
    assert jnp.allclose(out, ref), "mismatch vs reduce_window reference"

    print("KERNEL_OK")
</pallas_src>

<mosaic_0001>
module attributes {stable_mosaic.version = 11 : i64} {
  func.func @_maxpool3_kernel(%arg0: i32, %arg1: i32, %arg2: memref<1x15x3x5x4xf32, #tpu.memory_space<vmem>>, %arg3: memref<1x5x5x4xf32, #tpu.memory_space<vmem>>) attributes {dimension_semantics = [#tpu.dimension_semantics<parallel>, #tpu.dimension_semantics<parallel>], iteration_bounds = array<i64: 2, 1>, scalar_prefetch = 0 : i64, scratch_operands = 0 : i64, tpu.core_type = #tpu.core_type<tc>, window_params = [{transform_indices = @transform_0, window_bounds = array<i64: 1, 15, 3, 5, 4>}, {transform_indices = @transform_1, window_bounds = array<i64: 1, 5, 5, 4>}]} {
    %c0 = arith.constant 0 : index
    %c0_0 = arith.constant 0 : index
    %c0_1 = arith.constant 0 : index
    %c0_2 = arith.constant 0 : index
    %c0_3 = arith.constant 0 : index
    %0 = vector.load %arg2[%c0, %c0_0, %c0_1, %c0_2, %c0_3] : memref<1x15x3x5x4xf32, #tpu.memory_space<vmem>>, vector<1x15x3x5x4xf32>
    %1 = vector.extract_strided_slice %0 {offsets = [0, 0, 0, 0, 0], sizes = [1, 15, 1, 5, 4], strides = [1, 1, 1, 1, 1]} : vector<1x15x3x5x4xf32> to vector<1x15x1x5x4xf32>
    %2 = vector.shape_cast %1 : vector<1x15x1x5x4xf32> to vector<1x15x5x4xf32>
    %3 = vector.extract_strided_slice %0 {offsets = [0, 0, 1, 0, 0], sizes = [1, 15, 1, 5, 4], strides = [1, 1, 1, 1, 1]} : vector<1x15x3x5x4xf32> to vector<1x15x1x5x4xf32>
    %4 = vector.shape_cast %3 : vector<1x15x1x5x4xf32> to vector<1x15x5x4xf32>
    %5 = arith.maximumf %2, %4 : vector<1x15x5x4xf32>
    %6 = vector.extract_strided_slice %0 {offsets = [0, 0, 2, 0, 0], sizes = [1, 15, 1, 5, 4], strides = [1, 1, 1, 1, 1]} : vector<1x15x3x5x4xf32> to vector<1x15x1x5x4xf32>
    %7 = vector.shape_cast %6 : vector<1x15x1x5x4xf32> to vector<1x15x5x4xf32>
    %8 = arith.maximumf %5, %7 : vector<1x15x5x4xf32>
    %9 = vector.shape_cast %8 : vector<1x15x5x4xf32> to vector<1x5x3x5x4xf32>
    %10 = vector.extract_strided_slice %9 {offsets = [0, 0, 0, 0, 0], sizes = [1, 5, 1, 5, 4], strides = [1, 1, 1, 1, 1]} : vector<1x5x3x5x4xf32> to vector<1x5x1x5x4xf32>
    %11 = vector.shape_cast %10 : vector<1x5x1x5x4xf32> to vector<1x5x5x4xf32>
    %12 = vector.extract_strided_slice %9 {offsets = [0, 0, 1, 0, 0], sizes = [1, 5, 1, 5, 4], strides = [1, 1, 1, 1, 1]} : vector<1x5x3x5x4xf32> to vector<1x5x1x5x4xf32>
    %13 = vector.shape_cast %12 : vector<1x5x1x5x4xf32> to vector<1x5x5x4xf32>
    %14 = arith.maximumf %11, %13 : vector<1x5x5x4xf32>
    %15 = vector.extract_strided_slice %9 {offsets = [0, 0, 2, 0, 0], sizes = [1, 5, 1, 5, 4], strides = [1, 1, 1, 1, 1]} : vector<1x5x3x5x4xf32> to vector<1x5x1x5x4xf32>
    %16 = vector.shape_cast %15 : vector<1x5x1x5x4xf32> to vector<1x5x5x4xf32>
    %17 = arith.maximumf %14, %16 : vector<1x5x5x4xf32>
    %c0_4 = arith.constant 0 : index
    %c0_5 = arith.constant 0 : index
    %c0_6 = arith.constant 0 : index
    %c0_7 = arith.constant 0 : index
    %18 = vector.load %arg3[%c0_4, %c0_5, %c0_6, %c0_7] : memref<1x5x5x4xf32, #tpu.memory_space<vmem>>, vector<1x5x5x4xf32>
    tpu.vector_store %arg3[%c0_4, %c0_5, %c0_6, %c0_7], %17 {strides = array<i32>} : memref<1x5x5x4xf32, #tpu.memory_space<vmem>>, vector<1x5x5x4xf32>,
    return
  }
  func.func @transform_0(%arg0: i32, %arg1: i32) -> (i32, i32, i32, i32, i32) {
    %c0_i32 = arith.constant 0 : i32
    %c0_i32_0 = arith.constant 0 : i32
    %c0_i32_1 = arith.constant 0 : i32
    %c0_i32_2 = arith.constant 0 : i32
    return %arg0, %arg1, %c0_i32, %c0_i32_0, %c0_i32_1 : i32, i32, i32, i32, i32
  }
  func.func @transform_1(%arg0: i32, %arg1: i32) -> (i32, i32, i32, i32) {
    %c0_i32 = arith.constant 0 : i32
    %c0_i32_0 = arith.constant 0 : i32
    %c0_i32_1 = arith.constant 0 : i32
    return %arg0, %arg1, %c0_i32, %c0_i32_0 : i32, i32, i32, i32
  }
}

</mosaic_0001>

<bundles_post_ra>
// kernel: tpu_custom_call.1
= control target key start
LH: loop header
LB: loop body
LE: loop exit
PB: predicated region body
PF: predicated region fallthrough
CT: control target
= control target key end

     0   :  { %s409_s6 = smov 0   ;;  %s411_s7 = smov 0   ;;  %s507_s0 = inlined_call_operand.vmem [shape: f32[2,15,3,5,4], index: 0, kind: input, shape index: {}]   ;;  %s508_s1 = inlined_call_operand.vmem [shape: f32[2,5,5,4], index: 1, kind: output, shape index: {}]  }
   0x1   :  { %s413_s8 = smov 0  }
   0x2 LB: > { %s23_s9 = sadd.s32 1, %s393_s7  ;;  %p344_p0 = scmp.ge.s32.totalorder %s397_s8, 1  ;;  %s397_s8 = sphi %s413_s8, %s11_s8   ;;  %s393_s7 = sphi %s411_s7, %s510_s7   ;;  %s389_s6 = sphi %s409_s6, %s509_s6  }
   0x3   : > { %p25_p1 = scmp.ge.s32.totalorder %s23_s9, 2  ;;  %p109_p2 = scmp.lt.s32.totalorder %s397_s8, 3 }
   0x5   : > { %s512_s9 = smov (%p25_p1, %s23_s9), 0  ;;  %p110_p3 = pnand %p344_p0, %p109_p2 }
   0x6   : > { %p139_p4 = scmp.lt.s32.totalorder (!%p110_p3), %s389_s6, 1  ;;  %vm244_vm0 = vcmask (!%p110_p3), 28672  }
   0x7   : > { %113 = sbr.rel (%p110_p3) target bundleno = 42 (0x2a), region = 24 }
   0xe   : > { %s514_s6 = smov (!%p139_p4, %s389_s6), 1 }
   0xf   : > { %s349_s10 = smul.u32 360, %s514_s6 }
  0x10   : > { %s350_s14 = smul.u32 40, %s514_s6 }
  0x11   : > { %s433_s13 = scalar_lea.vmem %s507_s0, %s349_s10 }
  0x12   : > { %v159_v0 = vld [vmem:[%s433_s13] sm:$0x1f]  ;;  %v160_v1 = vld [vmem:[%s433_s13 + $0x8] sm:$0x1f]  ;;  %v161_v2 = vld [vmem:[%s433_s13 + $0x10] sm:$0x1f]  ;;  %s462_s17 = scalar_lea.vmem %s508_s1, %s350_s14 }
  0x13   : > { %v162_v3 = vld [vmem:[%s433_s13 + $0x18] sm:$0x1f]  ;;  %v163_v4 = vld [vmem:[%s433_s13 + $0x20] sm:$0x1f]  ;;  %v164_v5 = vld [vmem:[%s433_s13 + $0x28] sm:$0x1f]  ;;  %v204_v6 = vmax.f32 %v159_v0, %v160_v1 }
  0x14   : > { %v165_v7 = vld [vmem:[%s433_s13 + $0x30] sm:$0x1f]  ;;  %v166_v8 = vld [vmem:[%s433_s13 + $0x38] sm:$0x1f]  ;;  %v167_v9 = vld [vmem:[%s433_s13 + $0x40] sm:$0x1f]  ;;  %v205_v10 = vmax.f32 %v162_v3, %v163_v4 }
  0x15   : > { %v206_v11 = vmax.f32 %v165_v7, %v166_v8  ;;  %v219_v12 = vmax.f32 %v204_v6, %v161_v2  ;;  %v168_v13 = vld [vmem:[%s433_s13 + $0x48] sm:$0x1f]  ;;  %v169_v14 = vld [vmem:[%s433_s13 + $0x50] sm:$0x1f]  ;;  %v170_v15 = vld [vmem:[%s433_s13 + $0x58] sm:$0x1f] }
  0x16   : > { %v220_v16 = vmax.f32 %v205_v10, %v164_v5  ;;  %v171_v17 = vld [vmem:[%s433_s13 + $0x60] sm:$0x1f]  ;;  %v172_v18 = vld [vmem:[%s433_s13 + $0x68] sm:$0x1f]  ;;  %v173_v19 = vld [vmem:[%s433_s13 + $0x70] sm:$0x1f]  ;;  %v207_v20 = vmax.f32 %v168_v13, %v169_v14 }
  0x17   : > { %v221_v21 = vmax.f32 %v206_v11, %v167_v9  ;;  %v174_v22 = vld [vmem:[%s433_s13 + $0x78] sm:$0x1f]  ;;  %v175_v23 = vld [vmem:[%s433_s13 + $0x80] sm:$0x1f]  ;;  %v176_v24 = vld [vmem:[%s433_s13 + $0x88] sm:$0x1f]  ;;  %v208_v25 = vmax.f32 %v171_v17, %v172_v18 }
  0x18   : > { %v234_v26 = vmax.f32 %v219_v12, %v220_v16  ;;  %v209_v27 = vmax.f32 %v174_v22, %v175_v23  ;;  %v222_v28 = vmax.f32 %v207_v20, %v170_v15  ;;  %v177_v29 = vld [vmem:[%s433_s13 + $0x90] sm:$0x1f]  ;;  %v178_v30 = vld [vmem:[%s433_s13 + $0x98] sm:$0x1f]  ;;  %v179_v31 = vld [vmem:[%s433_s13 + $0xa0] sm:$0x1f] }
  0x19   : > { %v223_v32 = vmax.f32 %v208_v25, %v173_v19  ;;  %v180_v33 = vld [vmem:[%s433_s13 + $0xa8] sm:$0x1f]  ;;  %v181_v34 = vld [vmem:[%s433_s13 + $0xb0] sm:$0x1f]  ;;  %v182_v35 = vld [vmem:[%s433_s13 + $0xb8] sm:$0x1f]  ;;  %v210_v36 = vmax.f32 %v177_v29, %v178_v30 }
  0x1a   : > { %v239_v37 = vmax.f32 %v234_v26, %v221_v21  ;;  %v224_v38 = vmax.f32 %v209_v27, %v176_v24  ;;  %v183_v39 = vld [vmem:[%s433_s13 + $0xc0] sm:$0x1f]  ;;  %v184_v40 = vld [vmem:[%s433_s13 + $0xc8] sm:$0x1f]  ;;  %v185_v41 = vld [vmem:[%s433_s13 + $0xd0] sm:$0x1f]  ;;  %v211_v42 = vmax.f32 %v180_v33, %v181_v34 }
  0x1b   : > { %v235_v43 = vmax.f32 %v222_v28, %v223_v32  ;;  %v212_v44 = vmax.f32 %v183_v39, %v184_v40  ;;  %v225_v45 = vmax.f32 %v210_v36, %v179_v31  ;;  %v186_v46 = vld [vmem:[%s433_s13 + $0xd8] sm:$0x1f]  ;;  %v187_v47 = vld [vmem:[%s433_s13 + $0xe0] sm:$0x1f]  ;;  %v188_v48 = vld [vmem:[%s433_s13 + $0xe8] sm:$0x1f] }
  0x1c   : > { %245 = vst.msk [vmem:[%s462_s17] sm:$0x1f] %vm244_vm0, %v239_v37  ;;  %v226_v49 = vmax.f32 %v211_v42, %v182_v35  ;;  %v189_v50 = vld [vmem:[%s433_s13 + $0xf0] sm:$0x1f]  ;;  %v190_v51 = vld [vmem:[%s433_s13 + $0xf8] sm:$0x1f]  ;;  %v213_v53 = vmax.f32 %v186_v46, %v187_v47 }
  0x1d   : > { %v191_v52 = vld [vmem:[%s433_s13 + $0x100] sm:$0x1f]  ;;  %v240_v54 = vmax.f32 %v235_v43, %v224_v38  ;;  %v227_v55 = vmax.f32 %v212_v44, %v185_v41  ;;  %v192_v56 = vld [vmem:[%s433_s13 + $0x108] sm:$0x1f]  ;;  %v193_v57 = vld [vmem:[%s433_s13 + $0x110] sm:$0x1f]  ;;  %v214_v59 = vmax.f32 %v189_v50, %v190_v51 }
  0x1e   : > { %v194_v58 = vld [vmem:[%s433_s13 + $0x118] sm:$0x1f]  ;;  %v236_v60 = vmax.f32 %v225_v45, %v226_v49  ;;  %v215_v61 = vmax.f32 %v192_v56, %v193_v57  ;;  %v228_v62 = vmax.f32 %v213_v53, %v188_v48  ;;  %v195_v63 = vld [vmem:[%s433_s13 + $0x120] sm:$0x1f]  ;;  %v196_v0 = vld [vmem:[%s433_s13 + $0x128] sm:$0x1f] }
  0x1f   : > { %v197_v1 = vld [vmem:[%s433_s13 + $0x130] sm:$0x1f]  ;;  %246 = vst.msk [vmem:[%s462_s17 + $0x8] sm:$0x1f] %vm244_vm0, %v240_v54  ;;  %v229_v2 = vmax.f32 %v214_v59, %v191_v52  ;;  %v198_v3 = vld [vmem:[%s433_s13 + $0x138] sm:$0x1f]  ;;  %v216_v6 = vmax.f32 %v195_v63, %v196_v0 }
  0x20   : > { %v199_v4 = vld [vmem:[%s433_s13 + $0x140] sm:$0x1f]  ;;  %v200_v5 = vld [vmem:[%s433_s13 + $0x148] sm:$0x1f]  ;;  %v241_v7 = vmax.f32 %v236_v60, %v227_v55  ;;  %v230_v8 = vmax.f32 %v215_v61, %v194_v58  ;;  %v201_v9 = vld [vmem:[%s433_s13 + $0x150] sm:$0x1f] }
  0x21   : > { %v202_v10 = vld [vmem:[%s433_s13 + $0x158] sm:$0x1f]  ;;  %v203_v11 = vld [vmem:[%s433_s13 + $0x160] sm:$0x1f]  ;;  %v217_v12 = vmax.f32 %v198_v3, %v199_v4  ;;  %v237_v13 = vmax.f32 %v228_v62, %v229_v2  ;;  %v231_v15 = vmax.f32 %v216_v6, %v197_v1 }
  0x22   : > { %v218_v14 = vmax.f32 %v201_v9, %v202_v10  ;;  %247 = vst.msk [vmem:[%s462_s17 + $0x10] sm:$0x1f] %vm244_vm0, %v241_v7 }
  0x23   : > { %v232_v16 = vmax.f32 %v217_v12, %v200_v5  ;;  %v242_v17 = vmax.f32 %v237_v13, %v230_v8 }
  0x24   : > { %v233_v18 = vmax.f32 %v218_v14, %v203_v11 }
  0x25   : > { %v238_v19 = vmax.f32 %v231_v15, %v232_v16  ;;  %248 = vst.msk [vmem:[%s462_s17 + $0x18] sm:$0x1f] %vm244_vm0, %v242_v17 }
  0x27   : > { %v243_v20 = vmax.f32 %v238_v19, %v233_v18 }
  0x29   : > { %249 = vst.msk [vmem:[%s462_s17 + $0x20] sm:$0x1f] %vm244_vm0, %v243_v20 }
  0x2a PF: > { %s11_s8 = sadd.s32 1, %s397_s8   ;;  %s509_s6 = smov %s393_s7 }
  0x2b   : > { %p8_p5 = scmp.ge.s32.totalorder %s11_s8, 4   ;;  %s510_s7 = smov %s512_s9 }
  0x2d   :  { %10 = sbr.rel (!%p8_p5) target bundleno = 2 (0x2), region = 54 }

</bundles_post_ra>
